<compile_context>
chip_gen: v6e
topology: v6e:2x2x1
jax: 0.10.0
libtpu: 0.0.40
codegen_flags: <defaults>
</compile_context>

<pallas_src>
import functools

import numpy as np
import jax
import jax.numpy as jnp
from jax import lax
from jax.experimental import pallas as pl
from jax.experimental.pallas import tpu as pltpu


def _asneck_kernel(relu_mode, width, compute_dtype,
                   x_ref, w1_ref, w2a_ref, w2b_ref, w3_ref,
                   bn1b_ref, bn2b_ref, bn3b_ref,
                   wmask_ref, vmask_ref, out_ref):
    nb, _, hw = x_ref.shape
    cdt = compute_dtype

    # Constants (weights / BN shifts / masks) stay resident in VMEM across the grid.
    w1 = w1_ref[...].astype(cdt)                         # (Cr, Cin)   (BN1 scale folded in)
    w3 = w3_ref[...].astype(cdt)                         # (Cout, Cr)  (BN3 scale folded in)
    w2a = [w2a_ref[k].astype(cdt) for k in range(5)]     # 5 x (Cr, Cr)
    w2b = [w2b_ref[k].astype(cdt) for k in range(5)]     # 5 x (Cr, Cr) (BN2 scale folded in)
    bn1b = bn1b_ref[...]                                 # (Cr, 1)
    bn2b = bn2b_ref[...]                                 # (Cr, 1)
    bn3b = bn3b_ref[...]                                 # (Cout, 1)
    wmask = [wmask_ref[k] for k in range(5)]             # 5 x (1, HW)
    vmask = [vmask_ref[k] for k in range(5)]

    def mm(w, a):                                        # MXU dot, f32 accumulate
        return jnp.dot(w, a.astype(cdt), preferred_element_type=jnp.float32)

    def five_tap(act, ws, masks, step):
        # y = sum_k W_k @ shift_{k-2}(act): shifts are XLU rolls along the
        # flattened spatial lane axis, wrap-around zeroed by the 0/1 masks.
        out = mm(ws[2], act)                             # d = 0 tap: no shift
        for k in (0, 1, 3, 4):
            d = k - 2
            tap = pltpu.roll(act, (-d * step) % hw, axis=1) * masks[k]
            out = out + mm(ws[k], tap)
        return out

    for i in range(nb):                                  # images in this block
        x = x_ref[i].astype(jnp.float32)                 # (Cin, HW)

        # conv1 (1x1) -> BN1 (scale folded) -> ReLU
        h = jnp.maximum(mm(w1, x) + bn1b, 0.0)

        # conv2 = (1,5) then (5,1), no nonlinearity in between ('asym')
        h = five_tap(h, w2a, wmask, 1)                   # shifts along W
        h = five_tap(h, w2b, vmask, width)               # shifts along H
        h = jnp.maximum(h + bn2b, 0.0)                   # BN2 (scale folded) -> ReLU

        # conv3 (1x1) -> BN3 (scale folded)
        h = mm(w3, h) + bn3b

        if relu_mode == 'after':
            y = jnp.maximum(h, 0.0) + jnp.maximum(x, 0.0)
        else:
            y = jnp.maximum(h + x, 0.0)

        out_ref[i] = y.astype(out_ref.dtype)             # lane-dense store (Cout, HW)


def asneck_forward(x_nchw, params, *, relu_mode='after',
                   compute_dtype=jnp.bfloat16, images_per_block=1):
    N, Cin, H, W = x_nchw.shape
    Cr = params['w1'].shape[0]
    Cout = params['w3'].shape[0]
    if Cin != Cout:
        raise ValueError("residual add requires in_channels == out_channels")
    if N % images_per_block != 0:
        raise ValueError("batch must be divisible by images_per_block")
    HW = H * W
    nb = images_per_block

    x = x_nchw.reshape(N, Cin, HW)           # NCHW -> (N, C, H*W); no transpose

    # 0/1 border masks for the shifted taps, precomputed on the host.
    pos = np.arange(HW)
    col, row = pos % W, pos // W
    wmask = np.stack([(col + d >= 0) & (col + d < W) for d in range(-2, 3)])
    vmask = np.stack([(row + d >= 0) & (row + d < H) for d in range(-2, 3)])
    wmask = jnp.asarray(wmask.astype(np.float32).reshape(5, 1, HW))
    vmask = jnp.asarray(vmask.astype(np.float32).reshape(5, 1, HW))

    # Fold BN scales into the adjacent conv weights (in f32, on the host),
    # then cast MXU operands to compute_dtype.  Shifts stay as f32 biases.
    w1 = (params['bn1_scale'] * params['w1']).astype(compute_dtype)          # (Cr,1)*(Cr,Cin)
    w2a = params['w2a'].astype(compute_dtype)                                 # (5,Cr,Cr)
    w2b = (params['bn2_scale'][None] * params['w2b']).astype(compute_dtype)   # scale conv2b rows
    w3 = (params['bn3_scale'] * params['w3']).astype(compute_dtype)           # (Cout,1)*(Cout,Cr)

    consts = [w1, w2a, w2b, w3,
              params['bn1_shift'], params['bn2_shift'], params['bn3_shift'],
              wmask, vmask]

    def _const_spec(a):
        nd = a.ndim
        return pl.BlockSpec(a.shape, lambda n, _nd=nd: (0,) * _nd)

    kernel = functools.partial(_asneck_kernel, relu_mode, W, compute_dtype)

    out = pl.pallas_call(
        kernel,
        out_shape=jax.ShapeDtypeStruct((N, Cout, HW), x_nchw.dtype),
        grid=(N // nb,),
        in_specs=[pl.BlockSpec((nb, Cin, HW), lambda n: (n, 0, 0))]
                + [_const_spec(a) for a in consts],
        out_specs=pl.BlockSpec((nb, Cout, HW), lambda n: (n, 0, 0)),
        compiler_params=pltpu.CompilerParams(
            dimension_semantics=("parallel",)),   # v7x: shard batch across 2 TCs
    )(x, *consts)

    return out.reshape(N, Cout, H, W)             # already NCHW


# ---------------------- parameter construction -------------------------

def make_params(key, Cin, Cout, Cr, eps=1e-5):
    ks = jax.random.split(key, 7)
    # PyTorch OIHW conv weight layouts (bias=False everywhere).
    w1 = jax.random.normal(ks[0], (Cr, Cin, 1, 1), jnp.float32) * 0.1
    w2a = jax.random.normal(ks[1], (Cr, Cr, 1, 5), jnp.float32) * 0.1
    w2b = jax.random.normal(ks[2], (Cr, Cr, 5, 1), jnp.float32) * 0.1
    w3 = jax.random.normal(ks[3], (Cout, Cr, 1, 1), jnp.float32) * 0.1

    def bn(k, C):
        k1, k2, k3, k4 = jax.random.split(k, 4)
        g = jax.random.uniform(k1, (C,), minval=0.5, maxval=1.5)
        b = jax.random.normal(k2, (C,)) * 0.1
        m = jax.random.normal(k3, (C,)) * 0.1
        v = jax.random.uniform(k4, (C,), minval=0.5, maxval=1.5)
        return g, b, m, v

    bn1, bn2, bn3 = bn(ks[4], Cr), bn(ks[5], Cr), bn(ks[6], Cout)
    raw = dict(w1_oihw=w1, w2a_oihw=w2a, w2b_oihw=w2b, w3_oihw=w3,
               bn1=bn1, bn2=bn2, bn3=bn3)

    def fold(g, b, m, v):           # inference-mode BN folded to scale/shift
        s = g / jnp.sqrt(v + eps)
        return s.reshape(-1, 1), (b - m * s).reshape(-1, 1)

    bn1s, bn1b = fold(*bn1)
    bn2s, bn2b = fold(*bn2)
    bn3s, bn3b = fold(*bn3)

    params = dict(
        w1=w1[:, :, 0, 0],                               # (Cr, Cin)  [o, c]
        w2a=jnp.moveaxis(w2a[:, :, 0, :], -1, 0),        # (5, Cr, Cr) [k, o, c]
        w2b=jnp.moveaxis(w2b[:, :, :, 0], -1, 0),        # (5, Cr, Cr) [k, o, c]
        w3=w3[:, :, 0, 0],                               # (Cout, Cr) [o, c]
        bn1_scale=bn1s, bn1_shift=bn1b,
        bn2_scale=bn2s, bn2_shift=bn2b,
        bn3_scale=bn3s, bn3_shift=bn3b,
    )
    return params, raw


# ---------------------- pure-JAX reference (for checking) ---------------

def asneck_ref(x_nchw, raw, relu_mode='after', eps=1e-5):
    def conv(x, w_oihw, pad):
        return lax.conv_general_dilated(
            x, jnp.transpose(w_oihw, (2, 3, 1, 0)), (1, 1), pad,
            dimension_numbers=('NHWC', 'HWIO', 'NHWC'))

    def bn(x, g, b, m, v):
        return (x - m) * (g / jnp.sqrt(v + eps)) + b

    x = jnp.transpose(x_nchw, (0, 2, 3, 1))
    h = conv(x, raw['w1_oihw'], [(0, 0), (0, 0)])
    h = jnp.maximum(bn(h, *raw['bn1']), 0.0)
    h = conv(h, raw['w2a_oihw'], [(0, 0), (2, 2)])
    h = conv(h, raw['w2b_oihw'], [(2, 2), (0, 0)])
    h = jnp.maximum(bn(h, *raw['bn2']), 0.0)
    h = conv(h, raw['w3_oihw'], [(0, 0), (0, 0)])
    h = bn(h, *raw['bn3'])
    if relu_mode == 'after':
        y = jnp.maximum(h, 0.0) + jnp.maximum(x, 0.0)
    else:
        y = jnp.maximum(h + x, 0.0)
    return jnp.transpose(y, (0, 3, 1, 2))


if __name__ == "__main__":
    key = jax.random.PRNGKey(0)
    kx, kp = jax.random.split(key)

    # in_channels must equal out_channels for the residual add to be valid.
    N, Cin, H, W = 2, 16, 16, 16
    Cout = 16
    Cr = Cin // 4                                    # projection_ratio = 4

    x = jax.random.normal(kx, (N, Cin, H, W), jnp.float32)   # PyTorch NCHW input
    params, raw = make_params(kp, Cin, Cout, Cr)
    y_ref = asneck_ref(x, raw, relu_mode='after')

    # Exact-math check: f32 MXU path, two images folded into one grid step.
    y32 = asneck_forward(x, params, relu_mode='after',
                         compute_dtype=jnp.float32, images_per_block=2)
    y32 = jax.block_until_ready(y32)
    assert y32.shape == (N, Cout, H, W)
    assert jnp.allclose(y32, y_ref, atol=1e-4, rtol=1e-4), \
        float(jnp.max(jnp.abs(y32 - y_ref)))

    # bf16-fed MXU path: per-image grid steps on the parallel batch axis.
    # (Loose tolerance only because of the bf16 cast; the f32 path above is
    # the exact-math check.)
    ybf = asneck_forward(x, params, relu_mode='after',
                         compute_dtype=jnp.bfloat16, images_per_block=1)
    ybf = jax.block_until_ready(ybf)
    assert float(jnp.max(jnp.abs(ybf - y_ref))) < 1e-1

    print("KERNEL_OK")
</pallas_src>

<mosaic_0001>
module attributes {stable_mosaic.version = 11 : i64} {
  func.func @_asneck_kernel(%arg0: i32, %arg1: memref<2x16x256xf32, #tpu.memory_space<vmem>>, %arg2: memref<4x16xf32, #tpu.memory_space<vmem>>, %arg3: memref<5x4x4xf32, #tpu.memory_space<vmem>>, %arg4: memref<5x4x4xf32, #tpu.memory_space<vmem>>, %arg5: memref<16x4xf32, #tpu.memory_space<vmem>>, %arg6: memref<4x1xf32, #tpu.memory_space<vmem>>, %arg7: memref<4x1xf32, #tpu.memory_space<vmem>>, %arg8: memref<16x1xf32, #tpu.memory_space<vmem>>, %arg9: memref<5x1x256xf32, #tpu.memory_space<vmem>>, %arg10: memref<5x1x256xf32, #tpu.memory_space<vmem>>, %arg11: memref<2x16x256xf32, #tpu.memory_space<vmem>>) attributes {dimension_semantics = [#tpu.dimension_semantics<parallel>], iteration_bounds = array<i64: 1>, scalar_prefetch = 0 : i64, scratch_operands = 0 : i64, tpu.core_type = #tpu.core_type<tc>, window_params = [{transform_indices = @transform_0, window_bounds = array<i64: 2, 16, 256>}, {pipeline_mode = #tpu.pipeline_mode<synchronous>, transform_indices = @transform_1, window_bounds = array<i64: 4, 16>}, {pipeline_mode = #tpu.pipeline_mode<synchronous>, transform_indices = @transform_2, window_bounds = array<i64: 5, 4, 4>}, {pipeline_mode = #tpu.pipeline_mode<synchronous>, transform_indices = @transform_3, window_bounds = array<i64: 5, 4, 4>}, {pipeline_mode = #tpu.pipeline_mode<synchronous>, transform_indices = @transform_4, window_bounds = array<i64: 16, 4>}, {pipeline_mode = #tpu.pipeline_mode<synchronous>, transform_indices = @transform_5, window_bounds = array<i64: 4, 1>}, {pipeline_mode = #tpu.pipeline_mode<synchronous>, transform_indices = @transform_6, window_bounds = array<i64: 4, 1>}, {pipeline_mode = #tpu.pipeline_mode<synchronous>, transform_indices = @transform_7, window_bounds = array<i64: 16, 1>}, {pipeline_mode = #tpu.pipeline_mode<synchronous>, transform_indices = @transform_8, window_bounds = array<i64: 5, 1, 256>}, {pipeline_mode = #tpu.pipeline_mode<synchronous>, transform_indices = @transform_9, window_bounds = array<i64: 5, 1, 256>}, {transform_indices = @transform_10, window_bounds = array<i64: 2, 16, 256>}]} {
    %c0 = arith.constant 0 : index
    %c0_0 = arith.constant 0 : index
    %0 = vector.load %arg2[%c0, %c0_0] : memref<4x16xf32, #tpu.memory_space<vmem>>, vector<4x16xf32>
    %c0_1 = arith.constant 0 : index
    %c0_2 = arith.constant 0 : index
    %1 = vector.load %arg5[%c0_1, %c0_2] : memref<16x4xf32, #tpu.memory_space<vmem>>, vector<16x4xf32>
    %c0_3 = arith.constant 0 : index
    %c0_4 = arith.constant 0 : index
    %c0_5 = arith.constant 0 : index
    %2 = vector.load %arg3[%c0_3, %c0_4, %c0_5] : memref<5x4x4xf32, #tpu.memory_space<vmem>>, vector<1x4x4xf32>
    %3 = vector.shape_cast %2 : vector<1x4x4xf32> to vector<4x4xf32>
    %c1 = arith.constant 1 : index
    %c0_6 = arith.constant 0 : index
    %c0_7 = arith.constant 0 : index
    %4 = vector.load %arg3[%c1, %c0_6, %c0_7] : memref<5x4x4xf32, #tpu.memory_space<vmem>>, vector<1x4x4xf32>
    %5 = vector.shape_cast %4 : vector<1x4x4xf32> to vector<4x4xf32>
    %c2 = arith.constant 2 : index
    %c0_8 = arith.constant 0 : index
    %c0_9 = arith.constant 0 : index
    %6 = vector.load %arg3[%c2, %c0_8, %c0_9] : memref<5x4x4xf32, #tpu.memory_space<vmem>>, vector<1x4x4xf32>
    %7 = vector.shape_cast %6 : vector<1x4x4xf32> to vector<4x4xf32>
    %c3 = arith.constant 3 : index
    %c0_10 = arith.constant 0 : index
    %c0_11 = arith.constant 0 : index
    %8 = vector.load %arg3[%c3, %c0_10, %c0_11] : memref<5x4x4xf32, #tpu.memory_space<vmem>>, vector<1x4x4xf32>
    %9 = vector.shape_cast %8 : vector<1x4x4xf32> to vector<4x4xf32>
    %c4 = arith.constant 4 : index
    %c0_12 = arith.constant 0 : index
    %c0_13 = arith.constant 0 : index
    %10 = vector.load %arg3[%c4, %c0_12, %c0_13] : memref<5x4x4xf32, #tpu.memory_space<vmem>>, vector<1x4x4xf32>
    %11 = vector.shape_cast %10 : vector<1x4x4xf32> to vector<4x4xf32>
    %c0_14 = arith.constant 0 : index
    %c0_15 = arith.constant 0 : index
    %c0_16 = arith.constant 0 : index
    %12 = vector.load %arg4[%c0_14, %c0_15, %c0_16] : memref<5x4x4xf32, #tpu.memory_space<vmem>>, vector<1x4x4xf32>
    %13 = vector.shape_cast %12 : vector<1x4x4xf32> to vector<4x4xf32>
    %c1_17 = arith.constant 1 : index
    %c0_18 = arith.constant 0 : index
    %c0_19 = arith.constant 0 : index
    %14 = vector.load %arg4[%c1_17, %c0_18, %c0_19] : memref<5x4x4xf32, #tpu.memory_space<vmem>>, vector<1x4x4xf32>
    %15 = vector.shape_cast %14 : vector<1x4x4xf32> to vector<4x4xf32>
    %c2_20 = arith.constant 2 : index
    %c0_21 = arith.constant 0 : index
    %c0_22 = arith.constant 0 : index
    %16 = vector.load %arg4[%c2_20, %c0_21, %c0_22] : memref<5x4x4xf32, #tpu.memory_space<vmem>>, vector<1x4x4xf32>
    %17 = vector.shape_cast %16 : vector<1x4x4xf32> to vector<4x4xf32>
    %c3_23 = arith.constant 3 : index
    %c0_24 = arith.constant 0 : index
    %c0_25 = arith.constant 0 : index
    %18 = vector.load %arg4[%c3_23, %c0_24, %c0_25] : memref<5x4x4xf32, #tpu.memory_space<vmem>>, vector<1x4x4xf32>
    %19 = vector.shape_cast %18 : vector<1x4x4xf32> to vector<4x4xf32>
    %c4_26 = arith.constant 4 : index
    %c0_27 = arith.constant 0 : index
    %c0_28 = arith.constant 0 : index
    %20 = vector.load %arg4[%c4_26, %c0_27, %c0_28] : memref<5x4x4xf32, #tpu.memory_space<vmem>>, vector<1x4x4xf32>
    %21 = vector.shape_cast %20 : vector<1x4x4xf32> to vector<4x4xf32>
    %c0_29 = arith.constant 0 : index
    %c0_30 = arith.constant 0 : index
    %22 = vector.load %arg6[%c0_29, %c0_30] : memref<4x1xf32, #tpu.memory_space<vmem>>, vector<4x1xf32>
    %c0_31 = arith.constant 0 : index
    %c0_32 = arith.constant 0 : index
    %23 = vector.load %arg7[%c0_31, %c0_32] : memref<4x1xf32, #tpu.memory_space<vmem>>, vector<4x1xf32>
    %c0_33 = arith.constant 0 : index
    %c0_34 = arith.constant 0 : index
    %24 = vector.load %arg8[%c0_33, %c0_34] : memref<16x1xf32, #tpu.memory_space<vmem>>, vector<16x1xf32>
    %c0_35 = arith.constant 0 : index
    %c0_36 = arith.constant 0 : index
    %c0_37 = arith.constant 0 : index
    %25 = vector.load %arg9[%c0_35, %c0_36, %c0_37] : memref<5x1x256xf32, #tpu.memory_space<vmem>>, vector<1x1x256xf32>
    %26 = vector.shape_cast %25 : vector<1x1x256xf32> to vector<1x256xf32>
    %c1_38 = arith.constant 1 : index
    %c0_39 = arith.constant 0 : index
    %c0_40 = arith.constant 0 : index
    %27 = vector.load %arg9[%c1_38, %c0_39, %c0_40] : memref<5x1x256xf32, #tpu.memory_space<vmem>>, vector<1x1x256xf32>
    %28 = vector.shape_cast %27 : vector<1x1x256xf32> to vector<1x256xf32>
    %c3_41 = arith.constant 3 : index
    %c0_42 = arith.constant 0 : index
    %c0_43 = arith.constant 0 : index
    %29 = vector.load %arg9[%c3_41, %c0_42, %c0_43] : memref<5x1x256xf32, #tpu.memory_space<vmem>>, vector<1x1x256xf32>
    %30 = vector.shape_cast %29 : vector<1x1x256xf32> to vector<1x256xf32>
    %c4_44 = arith.constant 4 : index
    %c0_45 = arith.constant 0 : index
    %c0_46 = arith.constant 0 : index
    %31 = vector.load %arg9[%c4_44, %c0_45, %c0_46] : memref<5x1x256xf32, #tpu.memory_space<vmem>>, vector<1x1x256xf32>
    %32 = vector.shape_cast %31 : vector<1x1x256xf32> to vector<1x256xf32>
    %c0_47 = arith.constant 0 : index
    %c0_48 = arith.constant 0 : index
    %c0_49 = arith.constant 0 : index
    %33 = vector.load %arg10[%c0_47, %c0_48, %c0_49] : memref<5x1x256xf32, #tpu.memory_space<vmem>>, vector<1x1x256xf32>
    %34 = vector.shape_cast %33 : vector<1x1x256xf32> to vector<1x256xf32>
    %c1_50 = arith.constant 1 : index
    %c0_51 = arith.constant 0 : index
    %c0_52 = arith.constant 0 : index
    %35 = vector.load %arg10[%c1_50, %c0_51, %c0_52] : memref<5x1x256xf32, #tpu.memory_space<vmem>>, vector<1x1x256xf32>
    %36 = vector.shape_cast %35 : vector<1x1x256xf32> to vector<1x256xf32>
    %c3_53 = arith.constant 3 : index
    %c0_54 = arith.constant 0 : index
    %c0_55 = arith.constant 0 : index
    %37 = vector.load %arg10[%c3_53, %c0_54, %c0_55] : memref<5x1x256xf32, #tpu.memory_space<vmem>>, vector<1x1x256xf32>
    %38 = vector.shape_cast %37 : vector<1x1x256xf32> to vector<1x256xf32>
    %c4_56 = arith.constant 4 : index
    %c0_57 = arith.constant 0 : index
    %c0_58 = arith.constant 0 : index
    %39 = vector.load %arg10[%c4_56, %c0_57, %c0_58] : memref<5x1x256xf32, #tpu.memory_space<vmem>>, vector<1x1x256xf32>
    %40 = vector.shape_cast %39 : vector<1x1x256xf32> to vector<1x256xf32>
    %c0_59 = arith.constant 0 : index
    %c0_60 = arith.constant 0 : index
    %c0_61 = arith.constant 0 : index
    %41 = vector.load %arg1[%c0_59, %c0_60, %c0_61] : memref<2x16x256xf32, #tpu.memory_space<vmem>>, vector<1x16x256xf32>
    %42 = vector.shape_cast %41 : vector<1x16x256xf32> to vector<16x256xf32>
    %cst = arith.constant dense<0.000000e+00> : vector<4x256xf32>
    %43 = tpu.matmul %0, %42, %cst {dimension_numbers = #tpu.dot_dimension_numbers<[1], [0], [0], [1], [0, 0, 1, 1], [], []>} : vector<4x16xf32>, vector<16x256xf32>, vector<4x256xf32> -> vector<4x256xf32>
    %44 = vector.broadcast %22 : vector<4x1xf32> to vector<4x256xf32>
    %45 = arith.addf %43, %44 : vector<4x256xf32>
    %cst_62 = arith.constant 0.000000e+00 : f32
    %46 = vector.broadcast %cst_62 : f32 to vector<4x256xf32>
    %47 = arith.maximumf %45, %46 : vector<4x256xf32>
    %cst_63 = arith.constant dense<0.000000e+00> : vector<4x256xf32>
    %48 = tpu.matmul %7, %47, %cst_63 {dimension_numbers = #tpu.dot_dimension_numbers<[1], [0], [0], [1], [0, 0, 1, 1], [], []>} : vector<4x4xf32>, vector<4x256xf32>, vector<4x256xf32> -> vector<4x256xf32>
    %c2_i32 = arith.constant 2 : i32
    %49 = tpu.dynamic_rotate %47 by %c2_i32 dim 1 : vector<4x256xf32>, i32 -> vector<4x256xf32>
    %50 = vector.broadcast %26 : vector<1x256xf32> to vector<4x256xf32>
    %51 = arith.mulf %49, %50 : vector<4x256xf32>
    %cst_64 = arith.constant dense<0.000000e+00> : vector<4x256xf32>
    %52 = tpu.matmul %3, %51, %cst_64 {dimension_numbers = #tpu.dot_dimension_numbers<[1], [0], [0], [1], [0, 0, 1, 1], [], []>} : vector<4x4xf32>, vector<4x256xf32>, vector<4x256xf32> -> vector<4x256xf32>
    %53 = arith.addf %48, %52 : vector<4x256xf32>
    %c1_i32 = arith.constant 1 : i32
    %54 = tpu.dynamic_rotate %47 by %c1_i32 dim 1 : vector<4x256xf32>, i32 -> vector<4x256xf32>
    %55 = vector.broadcast %28 : vector<1x256xf32> to vector<4x256xf32>
    %56 = arith.mulf %54, %55 : vector<4x256xf32>
    %cst_65 = arith.constant dense<0.000000e+00> : vector<4x256xf32>
    %57 = tpu.matmul %5, %56, %cst_65 {dimension_numbers = #tpu.dot_dimension_numbers<[1], [0], [0], [1], [0, 0, 1, 1], [], []>} : vector<4x4xf32>, vector<4x256xf32>, vector<4x256xf32> -> vector<4x256xf32>
    %58 = arith.addf %53, %57 : vector<4x256xf32>
    %c255_i32 = arith.constant 255 : i32
    %59 = tpu.dynamic_rotate %47 by %c255_i32 dim 1 : vector<4x256xf32>, i32 -> vector<4x256xf32>
    %60 = vector.broadcast %30 : vector<1x256xf32> to vector<4x256xf32>
    %61 = arith.mulf %59, %60 : vector<4x256xf32>
    %cst_66 = arith.constant dense<0.000000e+00> : vector<4x256xf32>
    %62 = tpu.matmul %9, %61, %cst_66 {dimension_numbers = #tpu.dot_dimension_numbers<[1], [0], [0], [1], [0, 0, 1, 1], [], []>} : vector<4x4xf32>, vector<4x256xf32>, vector<4x256xf32> -> vector<4x256xf32>
    %63 = arith.addf %58, %62 : vector<4x256xf32>
    %c254_i32 = arith.constant 254 : i32
    %64 = tpu.dynamic_rotate %47 by %c254_i32 dim 1 : vector<4x256xf32>, i32 -> vector<4x256xf32>
    %65 = vector.broadcast %32 : vector<1x256xf32> to vector<4x256xf32>
    %66 = arith.mulf %64, %65 : vector<4x256xf32>
    %cst_67 = arith.constant dense<0.000000e+00> : vector<4x256xf32>
    %67 = tpu.matmul %11, %66, %cst_67 {dimension_numbers = #tpu.dot_dimension_numbers<[1], [0], [0], [1], [0, 0, 1, 1], [], []>} : vector<4x4xf32>, vector<4x256xf32>, vector<4x256xf32> -> vector<4x256xf32>
    %68 = arith.addf %63, %67 : vector<4x256xf32>
    %cst_68 = arith.constant dense<0.000000e+00> : vector<4x256xf32>
    %69 = tpu.matmul %17, %68, %cst_68 {dimension_numbers = #tpu.dot_dimension_numbers<[1], [0], [0], [1], [0, 0, 1, 1], [], []>} : vector<4x4xf32>, vector<4x256xf32>, vector<4x256xf32> -> vector<4x256xf32>
    %c32_i32 = arith.constant 32 : i32
    %70 = tpu.dynamic_rotate %68 by %c32_i32 dim 1 : vector<4x256xf32>, i32 -> vector<4x256xf32>
    %71 = vector.broadcast %34 : vector<1x256xf32> to vector<4x256xf32>
    %72 = arith.mulf %70, %71 : vector<4x256xf32>
    %cst_69 = arith.constant dense<0.000000e+00> : vector<4x256xf32>
    %73 = tpu.matmul %13, %72, %cst_69 {dimension_numbers = #tpu.dot_dimension_numbers<[1], [0], [0], [1], [0, 0, 1, 1], [], []>} : vector<4x4xf32>, vector<4x256xf32>, vector<4x256xf32> -> vector<4x256xf32>
    %74 = arith.addf %69, %73 : vector<4x256xf32>
    %c16_i32 = arith.constant 16 : i32
    %75 = tpu.dynamic_rotate %68 by %c16_i32 dim 1 : vector<4x256xf32>, i32 -> vector<4x256xf32>
    %76 = vector.broadcast %36 : vector<1x256xf32> to vector<4x256xf32>
    %77 = arith.mulf %75, %76 : vector<4x256xf32>
    %cst_70 = arith.constant dense<0.000000e+00> : vector<4x256xf32>
    %78 = tpu.matmul %15, %77, %cst_70 {dimension_numbers = #tpu.dot_dimension_numbers<[1], [0], [0], [1], [0, 0, 1, 1], [], []>} : vector<4x4xf32>, vector<4x256xf32>, vector<4x256xf32> -> vector<4x256xf32>
    %79 = arith.addf %74, %78 : vector<4x256xf32>
    %c240_i32 = arith.constant 240 : i32
    %80 = tpu.dynamic_rotate %68 by %c240_i32 dim 1 : vector<4x256xf32>, i32 -> vector<4x256xf32>
    %81 = vector.broadcast %38 : vector<1x256xf32> to vector<4x256xf32>
    %82 = arith.mulf %80, %81 : vector<4x256xf32>
    %cst_71 = arith.constant dense<0.000000e+00> : vector<4x256xf32>
    %83 = tpu.matmul %19, %82, %cst_71 {dimension_numbers = #tpu.dot_dimension_numbers<[1], [0], [0], [1], [0, 0, 1, 1], [], []>} : vector<4x4xf32>, vector<4x256xf32>, vector<4x256xf32> -> vector<4x256xf32>
    %84 = arith.addf %79, %83 : vector<4x256xf32>
    %c224_i32 = arith.constant 224 : i32
    %85 = tpu.dynamic_rotate %68 by %c224_i32 dim 1 : vector<4x256xf32>, i32 -> vector<4x256xf32>
    %86 = vector.broadcast %40 : vector<1x256xf32> to vector<4x256xf32>
    %87 = arith.mulf %85, %86 : vector<4x256xf32>
    %cst_72 = arith.constant dense<0.000000e+00> : vector<4x256xf32>
    %88 = tpu.matmul %21, %87, %cst_72 {dimension_numbers = #tpu.dot_dimension_numbers<[1], [0], [0], [1], [0, 0, 1, 1], [], []>} : vector<4x4xf32>, vector<4x256xf32>, vector<4x256xf32> -> vector<4x256xf32>
    %89 = arith.addf %84, %88 : vector<4x256xf32>
    %90 = vector.broadcast %23 : vector<4x1xf32> to vector<4x256xf32>
    %91 = arith.addf %89, %90 : vector<4x256xf32>
    %cst_73 = arith.constant 0.000000e+00 : f32
    %92 = vector.broadcast %cst_73 : f32 to vector<4x256xf32>
    %93 = arith.maximumf %91, %92 : vector<4x256xf32>
    %cst_74 = arith.constant dense<0.000000e+00> : vector<16x256xf32>
    %94 = tpu.matmul %1, %93, %cst_74 {dimension_numbers = #tpu.dot_dimension_numbers<[1], [0], [0], [1], [0, 0, 1, 1], [], []>} : vector<16x4xf32>, vector<4x256xf32>, vector<16x256xf32> -> vector<16x256xf32>
    %95 = vector.broadcast %24 : vector<16x1xf32> to vector<16x256xf32>
    %96 = arith.addf %94, %95 : vector<16x256xf32>
    %cst_75 = arith.constant 0.000000e+00 : f32
    %97 = vector.broadcast %cst_75 : f32 to vector<16x256xf32>
    %98 = arith.maximumf %96, %97 : vector<16x256xf32>
    %cst_76 = arith.constant 0.000000e+00 : f32
    %99 = vector.broadcast %cst_76 : f32 to vector<16x256xf32>
    %100 = arith.maximumf %42, %99 : vector<16x256xf32>
    %101 = arith.addf %98, %100 : vector<16x256xf32>
    %c0_77 = arith.constant 0 : index
    %c0_78 = arith.constant 0 : index
    %c0_79 = arith.constant 0 : index
    %102 = vector.load %arg11[%c0_77, %c0_78, %c0_79] : memref<2x16x256xf32, #tpu.memory_space<vmem>>, vector<1x16x256xf32>
    %103 = vector.shape_cast %102 : vector<1x16x256xf32> to vector<16x256xf32>
    %104 = vector.shape_cast %101 : vector<16x256xf32> to vector<1x16x256xf32>
    tpu.vector_store %arg11[%c0_77, %c0_78, %c0_79], %104 {strides = array<i32>} : memref<2x16x256xf32, #tpu.memory_space<vmem>>, vector<1x16x256xf32>,
    %c1_80 = arith.constant 1 : index
    %c0_81 = arith.constant 0 : index
    %c0_82 = arith.constant 0 : index
    %105 = vector.load %arg1[%c1_80, %c0_81, %c0_82] : memref<2x16x256xf32, #tpu.memory_space<vmem>>, vector<1x16x256xf32>
    %106 = vector.shape_cast %105 : vector<1x16x256xf32> to vector<16x256xf32>
    %cst_83 = arith.constant dense<0.000000e+00> : vector<4x256xf32>
    %107 = tpu.matmul %0, %106, %cst_83 {dimension_numbers = #tpu.dot_dimension_numbers<[1], [0], [0], [1], [0, 0, 1, 1], [], []>} : vector<4x16xf32>, vector<16x256xf32>, vector<4x256xf32> -> vector<4x256xf32>
    %108 = vector.broadcast %22 : vector<4x1xf32> to vector<4x256xf32>
    %109 = arith.addf %107, %108 : vector<4x256xf32>
    %cst_84 = arith.constant 0.000000e+00 : f32
    %110 = vector.broadcast %cst_84 : f32 to vector<4x256xf32>
    %111 = arith.maximumf %109, %110 : vector<4x256xf32>
    %cst_85 = arith.constant dense<0.000000e+00> : vector<4x256xf32>
    %112 = tpu.matmul %7, %111, %cst_85 {dimension_numbers = #tpu.dot_dimension_numbers<[1], [0], [0], [1], [0, 0, 1, 1], [], []>} : vector<4x4xf32>, vector<4x256xf32>, vector<4x256xf32> -> vector<4x256xf32>
    %c2_i32_86 = arith.constant 2 : i32
    %113 = tpu.dynamic_rotate %111 by %c2_i32_86 dim 1 : vector<4x256xf32>, i32 -> vector<4x256xf32>
    %114 = vector.broadcast %26 : vector<1x256xf32> to vector<4x256xf32>
    %115 = arith.mulf %113, %114 : vector<4x256xf32>
    %cst_87 = arith.constant dense<0.000000e+00> : vector<4x256xf32>
    %116 = tpu.matmul %3, %115, %cst_87 {dimension_numbers = #tpu.dot_dimension_numbers<[1], [0], [0], [1], [0, 0, 1, 1], [], []>} : vector<4x4xf32>, vector<4x256xf32>, vector<4x256xf32> -> vector<4x256xf32>
    %117 = arith.addf %112, %116 : vector<4x256xf32>
    %c1_i32_88 = arith.constant 1 : i32
    %118 = tpu.dynamic_rotate %111 by %c1_i32_88 dim 1 : vector<4x256xf32>, i32 -> vector<4x256xf32>
    %119 = vector.broadcast %28 : vector<1x256xf32> to vector<4x256xf32>
    %120 = arith.mulf %118, %119 : vector<4x256xf32>
    %cst_89 = arith.constant dense<0.000000e+00> : vector<4x256xf32>
    %121 = tpu.matmul %5, %120, %cst_89 {dimension_numbers = #tpu.dot_dimension_numbers<[1], [0], [0], [1], [0, 0, 1, 1], [], []>} : vector<4x4xf32>, vector<4x256xf32>, vector<4x256xf32> -> vector<4x256xf32>
    %122 = arith.addf %117, %121 : vector<4x256xf32>
    %c255_i32_90 = arith.constant 255 : i32
    %123 = tpu.dynamic_rotate %111 by %c255_i32_90 dim 1 : vector<4x256xf32>, i32 -> vector<4x256xf32>
    %124 = vector.broadcast %30 : vector<1x256xf32> to vector<4x256xf32>
    %125 = arith.mulf %123, %124 : vector<4x256xf32>
    %cst_91 = arith.constant dense<0.000000e+00> : vector<4x256xf32>
    %126 = tpu.matmul %9, %125, %cst_91 {dimension_numbers = #tpu.dot_dimension_numbers<[1], [0], [0], [1], [0, 0, 1, 1], [], []>} : vector<4x4xf32>, vector<4x256xf32>, vector<4x256xf32> -> vector<4x256xf32>
    %127 = arith.addf %122, %126 : vector<4x256xf32>
    %c254_i32_92 = arith.constant 254 : i32
    %128 = tpu.dynamic_rotate %111 by %c254_i32_92 dim 1 : vector<4x256xf32>, i32 -> vector<4x256xf32>
    %129 = vector.broadcast %32 : vector<1x256xf32> to vector<4x256xf32>
    %130 = arith.mulf %128, %129 : vector<4x256xf32>
    %cst_93 = arith.constant dense<0.000000e+00> : vector<4x256xf32>
    %131 = tpu.matmul %11, %130, %cst_93 {dimension_numbers = #tpu.dot_dimension_numbers<[1], [0], [0], [1], [0, 0, 1, 1], [], []>} : vector<4x4xf32>, vector<4x256xf32>, vector<4x256xf32> -> vector<4x256xf32>
    %132 = arith.addf %127, %131 : vector<4x256xf32>
    %cst_94 = arith.constant dense<0.000000e+00> : vector<4x256xf32>
    %133 = tpu.matmul %17, %132, %cst_94 {dimension_numbers = #tpu.dot_dimension_numbers<[1], [0], [0], [1], [0, 0, 1, 1], [], []>} : vector<4x4xf32>, vector<4x256xf32>, vector<4x256xf32> -> vector<4x256xf32>
    %c32_i32_95 = arith.constant 32 : i32
    %134 = tpu.dynamic_rotate %132 by %c32_i32_95 dim 1 : vector<4x256xf32>, i32 -> vector<4x256xf32>
    %135 = vector.broadcast %34 : vector<1x256xf32> to vector<4x256xf32>
    %136 = arith.mulf %134, %135 : vector<4x256xf32>
    %cst_96 = arith.constant dense<0.000000e+00> : vector<4x256xf32>
    %137 = tpu.matmul %13, %136, %cst_96 {dimension_numbers = #tpu.dot_dimension_numbers<[1], [0], [0], [1], [0, 0, 1, 1], [], []>} : vector<4x4xf32>, vector<4x256xf32>, vector<4x256xf32> -> vector<4x256xf32>
    %138 = arith.addf %133, %137 : vector<4x256xf32>
    %c16_i32_97 = arith.constant 16 : i32
    %139 = tpu.dynamic_rotate %132 by %c16_i32_97 dim 1 : vector<4x256xf32>, i32 -> vector<4x256xf32>
    %140 = vector.broadcast %36 : vector<1x256xf32> to vector<4x256xf32>
    %141 = arith.mulf %139, %140 : vector<4x256xf32>
    %cst_98 = arith.constant dense<0.000000e+00> : vector<4x256xf32>
    %142 = tpu.matmul %15, %141, %cst_98 {dimension_numbers = #tpu.dot_dimension_numbers<[1], [0], [0], [1], [0, 0, 1, 1], [], []>} : vector<4x4xf32>, vector<4x256xf32>, vector<4x256xf32> -> vector<4x256xf32>
    %143 = arith.addf %138, %142 : vector<4x256xf32>
    %c240_i32_99 = arith.constant 240 : i32
    %144 = tpu.dynamic_rotate %132 by %c240_i32_99 dim 1 : vector<4x256xf32>, i32 -> vector<4x256xf32>
    %145 = vector.broadcast %38 : vector<1x256xf32> to vector<4x256xf32>
    %146 = arith.mulf %144, %145 : vector<4x256xf32>
    %cst_100 = arith.constant dense<0.000000e+00> : vector<4x256xf32>
    %147 = tpu.matmul %19, %146, %cst_100 {dimension_numbers = #tpu.dot_dimension_numbers<[1], [0], [0], [1], [0, 0, 1, 1], [], []>} : vector<4x4xf32>, vector<4x256xf32>, vector<4x256xf32> -> vector<4x256xf32>
    %148 = arith.addf %143, %147 : vector<4x256xf32>
    %c224_i32_101 = arith.constant 224 : i32
    %149 = tpu.dynamic_rotate %132 by %c224_i32_101 dim 1 : vector<4x256xf32>, i32 -> vector<4x256xf32>
    %150 = vector.broadcast %40 : vector<1x256xf32> to vector<4x256xf32>
    %151 = arith.mulf %149, %150 : vector<4x256xf32>
    %cst_102 = arith.constant dense<0.000000e+00> : vector<4x256xf32>
    %152 = tpu.matmul %21, %151, %cst_102 {dimension_numbers = #tpu.dot_dimension_numbers<[1], [0], [0], [1], [0, 0, 1, 1], [], []>} : vector<4x4xf32>, vector<4x256xf32>, vector<4x256xf32> -> vector<4x256xf32>
    %153 = arith.addf %148, %152 : vector<4x256xf32>
    %154 = vector.broadcast %23 : vector<4x1xf32> to vector<4x256xf32>
    %155 = arith.addf %153, %154 : vector<4x256xf32>
    %cst_103 = arith.constant 0.000000e+00 : f32
    %156 = vector.broadcast %cst_103 : f32 to vector<4x256xf32>
    %157 = arith.maximumf %155, %156 : vector<4x256xf32>
    %cst_104 = arith.constant dense<0.000000e+00> : vector<16x256xf32>
    %158 = tpu.matmul %1, %157, %cst_104 {dimension_numbers = #tpu.dot_dimension_numbers<[1], [0], [0], [1], [0, 0, 1, 1], [], []>} : vector<16x4xf32>, vector<4x256xf32>, vector<16x256xf32> -> vector<16x256xf32>
    %159 = vector.broadcast %24 : vector<16x1xf32> to vector<16x256xf32>
    %160 = arith.addf %158, %159 : vector<16x256xf32>
    %cst_105 = arith.constant 0.000000e+00 : f32
    %161 = vector.broadcast %cst_105 : f32 to vector<16x256xf32>
    %162 = arith.maximumf %160, %161 : vector<16x256xf32>
    %cst_106 = arith.constant 0.000000e+00 : f32
    %163 = vector.broadcast %cst_106 : f32 to vector<16x256xf32>
    %164 = arith.maximumf %106, %163 : vector<16x256xf32>
    %165 = arith.addf %162, %164 : vector<16x256xf32>
    %c1_107 = arith.constant 1 : index
    %c0_108 = arith.constant 0 : index
    %c0_109 = arith.constant 0 : index
    %166 = vector.load %arg11[%c1_107, %c0_108, %c0_109] : memref<2x16x256xf32, #tpu.memory_space<vmem>>, vector<1x16x256xf32>
    %167 = vector.shape_cast %166 : vector<1x16x256xf32> to vector<16x256xf32>
    %168 = vector.shape_cast %165 : vector<16x256xf32> to vector<1x16x256xf32>
    tpu.vector_store %arg11[%c1_107, %c0_108, %c0_109], %168 {strides = array<i32>} : memref<2x16x256xf32, #tpu.memory_space<vmem>>, vector<1x16x256xf32>,
    return
  }
  func.func @transform_0(%arg0: i32) -> (i32, i32, i32) {
    %c0_i32 = arith.constant 0 : i32
    %c0_i32_0 = arith.constant 0 : i32
    %c0_i32_1 = arith.constant 0 : i32
    return %arg0, %c0_i32, %c0_i32_0 : i32, i32, i32
  }
  func.func @transform_1(%arg0: i32) -> (i32, i32) {
    %c0_i32 = arith.constant 0 : i32
    %c0_i32_0 = arith.constant 0 : i32
    %c0_i32_1 = arith.constant 0 : i32
    return %c0_i32, %c0_i32_0 : i32, i32
  }
  func.func @transform_2(%arg0: i32) -> (i32, i32, i32) {
    %c0_i32 = arith.constant 0 : i32
    %c0_i32_0 = arith.constant 0 : i32
    %c0_i32_1 = arith.constant 0 : i32
    %c0_i32_2 = arith.constant 0 : i32
    return %c0_i32, %c0_i32_0, %c0_i32_1 : i32, i32, i32
  }
  func.func @transform_3(%arg0: i32) -> (i32, i32, i32) {
    %c0_i32 = arith.constant 0 : i32
    %c0_i32_0 = arith.constant 0 : i32
    %c0_i32_1 = arith.constant 0 : i32
    %c0_i32_2 = arith.constant 0 : i32
    return %c0_i32, %c0_i32_0, %c0_i32_1 : i32, i32, i32
  }
  func.func @transform_4(%arg0: i32) -> (i32, i32) {
    %c0_i32 = arith.constant 0 : i32
    %c0_i32_0 = arith.constant 0 : i32
    %c0_i32_1 = arith.constant 0 : i32
    return %c0_i32, %c0_i32_0 : i32, i32
  }
  func.func @transform_5(%arg0: i32) -> (i32, i32) {
    %c0_i32 = arith.constant 0 : i32
    %c0_i32_0 = arith.constant 0 : i32
    %c0_i32_1 = arith.constant 0 : i32
    return %c0_i32, %c0_i32_0 : i32, i32
  }
  func.func @transform_6(%arg0: i32) -> (i32, i32) {
    %c0_i32 = arith.constant 0 : i32
    %c0_i32_0 = arith.constant 0 : i32
    %c0_i32_1 = arith.constant 0 : i32
    return %c0_i32, %c0_i32_0 : i32, i32
  }
  func.func @transform_7(%arg0: i32) -> (i32, i32) {
    %c0_i32 = arith.constant 0 : i32
    %c0_i32_0 = arith.constant 0 : i32
    %c0_i32_1 = arith.constant 0 : i32
    return %c0_i32, %c0_i32_0 : i32, i32
  }
  func.func @transform_8(%arg0: i32) -> (i32, i32, i32) {
    %c0_i32 = arith.constant 0 : i32
    %c0_i32_0 = arith.constant 0 : i32
    %c0_i32_1 = arith.constant 0 : i32
    %c0_i32_2 = arith.constant 0 : i32
    return %c0_i32, %c0_i32_0, %c0_i32_1 : i32, i32, i32
  }
  func.func @transform_9(%arg0: i32) -> (i32, i32, i32) {
    %c0_i32 = arith.constant 0 : i32
    %c0_i32_0 = arith.constant 0 : i32
    %c0_i32_1 = arith.constant 0 : i32
    %c0_i32_2 = arith.constant 0 : i32
    return %c0_i32, %c0_i32_0, %c0_i32_1 : i32, i32, i32
  }
  func.func @transform_10(%arg0: i32) -> (i32, i32, i32) {
    %c0_i32 = arith.constant 0 : i32
    %c0_i32_0 = arith.constant 0 : i32
    %c0_i32_1 = arith.constant 0 : i32
    return %arg0, %c0_i32, %c0_i32_0 : i32, i32, i32
  }
}

</mosaic_0001>

<bundles_post_ra>
// kernel: tpu_custom_call.1
= control target key start
LH: loop header
LB: loop body
LE: loop exit
PB: predicated region body
PF: predicated region fallthrough
CT: control target
= control target key end

     0   :  { %15 = vsyncpa [#allocation3], 0  ;;  %s3030_s0 = inlined_call_operand.vmem [shape: f32[2,16,256], index: 0, kind: input, shape index: {}]   ;;  %s3031_s1 = inlined_call_operand.hbm [shape: f32[4,16], index: 1, kind: input, shape index: {}]   ;;  %s3032_s2 = inlined_call_operand.vmem [shape: f32[5,4,4], index: 2, kind: input, shape index: {}]   ;;  %s3033_s3 = inlined_call_operand.vmem [shape: f32[5,4,4], index: 3, kind: input, shape index: {}]   ;;  %s3034_s4 = inlined_call_operand.vmem [shape: f32[16,4], index: 4, kind: input, shape index: {}]   ;;  %s3035_s5 = inlined_call_operand.vmem [shape: f32[4,1], index: 5, kind: input, shape index: {}]   ;;  %s3036_s6 = inlined_call_operand.vmem [shape: f32[4,1], index: 6, kind: input, shape index: {}]   ;;  %s3037_s7 = inlined_call_operand.vmem [shape: f32[16,1], index: 7, kind: input, shape index: {}]   ;;  %s3038_s8 = inlined_call_operand.vmem [shape: f32[5,1,256], index: 8, kind: input, shape index: {}]   ;;  %s3039_s9 = inlined_call_operand.vmem [shape: f32[5,1,256], index: 9, kind: input, shape index: {}]   ;;  %s3040_s10 = inlined_call_operand.hbm [shape: f32[2,16,256], index: 10, kind: output, shape index: {}]  }
   0x1   :  { %16 = vsyncpa [#allocation4], 0  ;;  %s2465_s13 = smov [#allocation2]  }
   0x2   :  { %s25_s14 = sshll.u32 %s2465_s13, 4  ;;  %s26_s14 = int_to_ptr.vmem [resolvable:$true] %s25_s14 }
   0x3   :  { %s2429_s15 = scalar_lea.vmem %s26_s14, 64  ;;  %p2434_p1 = scmp.lt.s32.totalorder %s26_s14, %s26_s14 }
   0x4   :  { %p2430_p0 = scmp.ne.s32.totalorder %s26_s14, %s2429_s15  ;;  %p2435_p2 = scmp.lt.s32.totalorder %s2429_s15, %s2429_s15 }
   0x6   :  { %p2436_p3 = por %p2435_p2, %p2434_p1 }
   0x8   :  { %p2437_p4 = pnand %p2436_p3, %p2430_p0 }
   0xa   :  { %2440 = shalt.err (!%p2437_p4)
}
   0xb   :  { %28 = dma.hbm_to_vmem [thread:$0]  %s3031_s1, 64, %s26_s14, [#allocation3]  }
   0xc   :  { %2461 = dma.done.wait [#allocation3], 64  }
   0xd   :  { %2462 = vsyncadd [#allocation3], 4294967232  ;;  %v2466_v0 = vmov 0.0   ;;  %v2467_v1 = vmov 0   ;;  %v2541_v2 = vld [vmem:[%s3030_s0 + $0x18] sm:$0xff]  ;;  %v2546_v3 = vld [vmem:[%s3030_s0 + $0x10] sm:$0xff]  ;;  %v177_v16 = vlaneseq }
   0xe   :  { %164 = vmatprep.mubr.f32.mxu0 %v2466_v0  ;;  %2419 = vset.pattern.permute.xlu0 %v2467_v1  ;;  %v2551_v4 = vld [vmem:[%s3030_s0 + $0x8] sm:$0xff]  ;;  %v2557_v5 = vld [vmem:[%s3030_s0] sm:$0xff]  ;;  %vm96_vm0 = vcmask 130048   ;;  %vm199_vm1 = vcmask 1043456   ;;  %s2469_s27 = smov 2   ;;  %vm195_vm2 = vcmask 31744  }
   0xf   :  { %350 = vmatprep.mubr.f32.mxu1 %v2466_v0  ;;  %2420 = vset.pattern.permute.xlu1 %v2467_v1  ;;  %v2560_v6 = vld [vmem:[#allocation2] sm:$0xf]  ;;  %v2580_v15 = vld [vmem:[%s3032_s2 + $0x8] sm:$0xf]  ;;  %s2470_s30 = smov 127   ;;  %s2471_s11 = smov 126  }
  0x10   :  { %128 = vmatprep.subr.mxu0 %v2541_v2  ;;  %v69_v7 = vld [vmem:[%s3035_s5] sm:$0xf]  ;;  %s2468_s5 = smov 1   ;;  %v184_v17 = vshrl.u32 %v177_v16, 7  ;;  %v2592_v18 = vand.u32 127, %v177_v16  ;;  %s2473_s29 = smov 16  }
  0x11   :  { %129 = vmatpush1.msra.mxu0 %v2546_v3  ;;  %93 = vperm.xlu0 %2419, %v69_v7   ;;  %v73_v21 = vld [vmem:[%s3038_s8] sm:$0x3]  ;;  %v2326_v24 = vld [vmem:[%s3038_s8 + $0x2] sm:$0x3]  ;;  %v2327_v27 = vld [vmem:[%s3038_s8 + $0x6] sm:$0x3] }
  0x12   :  { %130 = vmatprep.subr.mxu0 %v2551_v4  ;;  %v2594_v19 = vsub.s32 0, %v184_v17  ;;  %v2596_v20 = vsub.s32 1, %v184_v17  ;;  %vm179_vm3 = vcmp.lt.s32.totalorder %v2592_v18, 2  ;;  %vm361_vm4 = vcmp.lt.s32.totalorder %v2592_v18, 1  ;;  %v2328_v40 = vld [vmem:[%s3038_s8 + $0x8] sm:$0x3] }
  0x13   :  { %131 = vmatpush1.msra.mxu0 %v2557_v5  ;;  %vm463_vm5 = vcmp.lt.s32.totalorder %v2592_v18, 127  ;;  %v2644_v41 = vld [vmem:[%s3032_s2] sm:$0xf]  ;;  %vm565_vm6 = vcmp.lt.s32.totalorder %v2592_v18, 126  ;;  %v2671_v52 = vld [vmem:[%s3032_s2 + $0x4] sm:$0xf] }
  0x14   :  { %2332 = vmatmul.mubr.msk.f32.vlgmr.msra.gmra.mxu0 %vm96_vm0, %v2560_v6  ;;  %v2606_v25 = vrot.slane %v73_v21, %v2594_v19  ;;  %v2609_v26 = vrot.slane %v73_v21, %v2596_v20  ;;  %v2616_v29 = vrot.slane %v2326_v24, %v2594_v19  ;;  %v2619_v30 = vrot.slane %v2326_v24, %v2596_v20  ;;  %v2676_v53 = vld [vmem:[%s3032_s2 + $0xc] sm:$0xf]  ;;  %v2694_v60 = vld [vmem:[%s3032_s2 + $0x10] sm:$0xf]  ;;  %s2472_s2 = smov 32   ;;  %s2474_s12 = smov 96  }
  0x15   :  { %270 = vmatprep.mubr.f32.mxu0 %v2466_v0  ;;  %v2629_v35 = vrot.slane %v2327_v27, %v2594_v19  ;;  %v2636_v39 = vrot.slane %v2327_v27, %v2596_v20  ;;  %v2655_v48 = vrot.slane %v2328_v40, %v2594_v19  ;;  %v2664_v51 = vrot.slane %v2328_v40, %v2596_v20  ;;  %s2475_s13 = smov 112  }
  0x16   :  { %vm667_vm7 = vcmp.lt.s32.totalorder %v2592_v18, 32  ;;  %vm847_vm8 = vcmp.lt.s32.totalorder %v2592_v18, 16  ;;  %vm1051_vm9 = vcmp.lt.s32.totalorder %v2592_v18, 96  ;;  %vm949_vm10 = vcmp.lt.s32.totalorder %v2592_v18, 112 }
  0x8c   :  { %v2570_v8 = vpop.permute.xlu0 %93 }
  0xd4   :  { %v166_v9 = vpop.f32.mrf.mxu0 }
  0xd5   :  { %v167_v10 = vadd.f32 %v166_v9, %v2570_v8 }
  0xd6   :  { %v168_v11 = vpop.f32.mrf.mxu0 }
  0xd7   :  { %v171_v12 = vmax.f32 %v167_v10, 0.0  ;;  %v169_v13 = vadd.f32 %v168_v11, %v2570_v8 }
  0xd9   :  { %v172_v14 = vmax.f32 %v169_v13, 0.0  ;;  %357 = vrot.lane.b32.xlu1 %v171_v12, %s2468_s5  ;;  %173 = vrot.lane.b32.xlu0 %v171_v12, %s2469_s27 }
  0xdb   :  { %2336 = vmatprep.subr.msk.mxu1 %vm199_vm1, %v172_v14 }
  0xdc   :  { %2337 = vmatpush1.msk.msra.mxu1 %vm199_vm1, %v171_v12 }
  0xdd   :  { %175 = vrot.lane.b32.xlu1 %v172_v14, %s2469_s27  ;;  %359 = vrot.lane.b32.xlu0 %v172_v14, %s2468_s5 }
  0xde   :  { %2338 = vmatmul.mubr.msk.f32.vlgmr.msra.gmra.mxu1 %vm195_vm2, %v2580_v15 }
  0xdf   :  { %552 = vmatprep.mubr.f32.mxu1 %v2466_v0 }
  0xe1   :  { %459 = vrot.lane.b32.xlu1 %v171_v12, %s2470_s30  ;;  %461 = vrot.lane.b32.xlu0 %v172_v14, %s2470_s30 }
  0xe5   :  { %561 = vrot.lane.b32.xlu1 %v171_v12, %s2471_s11  ;;  %563 = vrot.lane.b32.xlu0 %v172_v14, %s2471_s11 }
 0x14b   :  { %v358_v22 = vpop.permute.xlu1 %357  ;;  %v174_v23 = vpop.permute.xlu0 %173 }
 0x14f   :  { %v176_v28 = vpop.permute.xlu1 %175  ;;  %v360_v31 = vpop.permute.xlu0 %359 }
 0x150   :  { %v180_v32 = vsel %vm179_vm3, %v174_v23, %v176_v28  ;;  %v181_v33 = vsel %vm179_vm3, %v176_v28, %v174_v23  ;;  %v362_v34 = vsel %vm361_vm4, %v358_v22, %v360_v31  ;;  %v363_v38 = vsel %vm361_vm4, %v360_v31, %v358_v22  ;;  %v2706_v28 = vld [vmem:[%s3033_s3 + $0x8] sm:$0xf]  ;;  %v70_v31 = vld [vmem:[%s3036_s6] sm:$0xf] }
 0x151   :  { %v193_v36 = vmul.f32 %v2606_v25, %v181_v33  ;;  %v194_v37 = vmul.f32 %v2609_v26, %v180_v32  ;;  %v376_v42 = vmul.f32 %v2619_v30, %v362_v34  ;;  %v375_v45 = vmul.f32 %v2616_v29, %v363_v38  ;;  %v80_v32 = vld [vmem:[%s3039_s9] sm:$0x3] }
 0x152   :  { %v2728_v34 = vrot.slane %v80_v32, %v2594_v19 }
 0x153   :  { %v460_v43 = vpop.permute.xlu1 %459  ;;  %2333 = vmatprep.subr.msk.mxu0 %vm199_vm1, %v194_v37  ;;  %v462_v44 = vpop.permute.xlu0 %461  ;;  %v2329_v37 = vld [vmem:[%s3039_s9 + $0x2] sm:$0x3] }
 0x154   :  { %v464_v46 = vsel %vm463_vm5, %v460_v43, %v462_v44  ;;  %v465_v47 = vsel %vm463_vm5, %v462_v44, %v460_v43  ;;  %2334 = vmatpush1.msk.msra.mxu0 %vm199_vm1, %v193_v36  ;;  %v2731_v36 = vrot.slane %v80_v32, %v2596_v20  ;;  %v2835_v32 = vld [vmem:[%s3030_s0 + $0x20] sm:$0xff] }
 0x155   :  { %v477_v49 = vmul.f32 %v2629_v35, %v464_v46  ;;  %v478_v50 = vmul.f32 %v2636_v39, %v465_v47  ;;  %2335 = vmatmul.mubr.msk.f32.vlgmr.msra.gmra.mxu0 %vm195_vm2, %v2644_v41  ;;  %2339 = vmatprep.subr.msk.mxu0 %vm199_vm1, %v376_v42  ;;  %v2744_v46 = vrot.slane %v2329_v37, %v2594_v19 }
 0x156   :  { %2340 = vmatpush1.msk.msra.mxu0 %vm199_vm1, %v375_v45  ;;  %450 = vmatprep.mubr.f32.mxu0 %v2466_v0  ;;  %v2747_v47 = vrot.slane %v2329_v37, %v2596_v20 }
 0x157   :  { %v562_v54 = vpop.permute.xlu1 %561  ;;  %v564_v55 = vpop.permute.xlu0 %563  ;;  %2342 = vmatprep.subr.msk.mxu1 %vm199_vm1, %v478_v50  ;;  %v2331_v50 = vld [vmem:[%s3039_s9 + $0x8] sm:$0x3] }
 0x158   :  { %v566_v56 = vsel %vm565_vm6, %v562_v54, %v564_v55  ;;  %v567_v57 = vsel %vm565_vm6, %v564_v55, %v562_v54  ;;  %2343 = vmatpush1.msk.msra.mxu1 %vm199_vm1, %v477_v49  ;;  %v2752_v49 = vld [vmem:[%s3033_s3] sm:$0xf] }
 0x159   :  { %v579_v58 = vmul.f32 %v2655_v48, %v566_v56  ;;  %v580_v59 = vmul.f32 %v2664_v51, %v567_v57  ;;  %2341 = vmatmul.mubr.msk.f32.vlgmr.msra.gmra.mxu0 %vm195_vm2, %v2671_v52  ;;  %2344 = vmatmul.mubr.msk.f32.vlgmr.msra.gmra.mxu1 %vm195_vm2, %v2676_v53 }
 0x15a   :  { %654 = vmatprep.mubr.f32.mxu0 %v2466_v0  ;;  %756 = vmatprep.mubr.f32.mxu1 %v2466_v0 }
 0x15b   :  { %2345 = vmatprep.subr.msk.mxu0 %vm199_vm1, %v580_v59 }
 0x15c   :  { %2346 = vmatpush1.msk.msra.mxu0 %vm199_vm1, %v579_v58 }
 0x15d   :  { %2347 = vmatmul.mubr.msk.f32.vlgmr.msra.gmra.mxu0 %vm195_vm2, %v2694_v60 }
 0x15e   :  { %836 = vmatprep.mubr.f32.mxu0 %v2466_v0 }
 0x19e   :  { %v352_v61 = vpop.f32.mrf.mxu1 }
 0x1a0   :  { %v354_v63 = vpop.f32.mrf.mxu1 }
 0x215   :  { %v272_v62 = vpop.f32.mrf.mxu0 }
 0x216   :  { %v353_v7 = vadd.f32 %v352_v61, %v272_v62  ;;  %v2769_v61 = vrot.slane %v2331_v50, %v2594_v19  ;;  %v2772_v62 = vrot.slane %v2331_v50, %v2596_v20 }
 0x217   :  { %v274_v1 = vpop.f32.mrf.mxu0 }
 0x218   :  { %v355_v11 = vadd.f32 %v354_v63, %v274_v1  ;;  %v2778_v63 = vld [vmem:[%s3033_s3 + $0x4] sm:$0xf] }
 0x219   :  { %v452_v9 = vpop.f32.mrf.mxu0  ;;  %v554_v10 = vpop.f32.mrf.mxu1  ;;  %v2330_v1 = vld [vmem:[%s3039_s9 + $0x6] sm:$0x3] }
 0x21a   :  { %v457_v12 = vadd.f32 %v452_v9, %v353_v7 }
 0x21b   :  { %v454_v13 = vpop.f32.mrf.mxu0  ;;  %v556_v17 = vpop.f32.mrf.mxu1 }
 0x21c   :  { %v559_v14 = vadd.f32 %v554_v10, %v457_v12  ;;  %v458_v16 = vadd.f32 %v454_v13, %v355_v11  ;;  %v2795_v13 = vrot.slane %v2330_v1, %v2594_v19  ;;  %v2815_v19 = vld [vmem:[%s3030_s0 + $0x30] sm:$0xff] }
 0x21d   :  { %v656_v21 = vpop.f32.mrf.mxu0 }
 0x21e   :  { %v560_v22 = vadd.f32 %v556_v17, %v458_v16  ;;  %v661_v23 = vadd.f32 %v656_v21, %v559_v14  ;;  %v2798_v14 = vrot.slane %v2330_v1, %v2596_v20  ;;  %v2804_v16 = vld [vmem:[%s3033_s3 + $0x10] sm:$0xf]  ;;  %v2809_v17 = vld [vmem:[%s3030_s0 + $0x38] sm:$0xff] }
 0x21f   :  { %v658_v24 = vpop.f32.mrf.mxu0 }
 0x220   :  { %v662_v27 = vadd.f32 %v658_v24, %v560_v22  ;;  %663 = vrot.lane.b32.xlu1 %v661_v23, %s2472_s2  ;;  %v2825_v24 = vld [vmem:[%s3030_s0 + $0x28] sm:$0xff] }
 0x222   :  { %665 = vrot.lane.b32.xlu0 %v662_v27, %s2472_s2  ;;  %2351 = vmatprep.subr.msk.mxu0 %vm199_vm1, %v662_v27 }
 0x223   :  { %2352 = vmatpush1.msk.msra.mxu0 %vm199_vm1, %v661_v23 }
 0x224   :  { %843 = vrot.lane.b32.xlu1 %v661_v23, %s2473_s29  ;;  %2353 = vmatmul.mubr.msk.f32.vlgmr.msra.gmra.mxu0 %vm195_vm2, %v2706_v28 }
 0x225   :  { %1038 = vmatprep.mubr.f32.mxu0 %v2466_v0 }
 0x226   :  { %845 = vrot.lane.b32.xlu0 %v662_v27, %s2473_s29 }
 0x228   :  { %1047 = vrot.lane.b32.xlu1 %v661_v23, %s2474_s12 }
 0x22a   :  { %1049 = vrot.lane.b32.xlu0 %v662_v27, %s2474_s12 }
 0x22c   :  { %945 = vrot.lane.b32.xlu1 %v661_v23, %s2475_s13 }
 0x22e   :  { %947 = vrot.lane.b32.xlu0 %v662_v27, %s2475_s13 }
 0x230   :  { %1151 = vperm.xlu1 %2420, %v70_v31  }
 0x292   :  { %v664_v33 = vpop.permute.xlu1 %663 }
 0x294   :  { %v666_v38 = vpop.permute.xlu0 %665 }
 0x295   :  { %v668_v40 = vsel %vm667_vm7, %v664_v33, %v666_v38  ;;  %v669_v42 = vsel %vm667_vm7, %v666_v38, %v664_v33  ;;  %v2842_v33 = vld [vmem:[%s3033_s3 + $0xc] sm:$0xf] }
 0x296   :  { %v681_v43 = vmul.f32 %v2728_v34, %v669_v42  ;;  %v682_v44 = vmul.f32 %v2731_v36, %v668_v40  ;;  %v844_v45 = vpop.permute.xlu1 %843 }
 0x298   :  { %v846_v54 = vpop.permute.xlu0 %845  ;;  %2348 = vmatprep.subr.msk.mxu1 %vm199_vm1, %v682_v44 }
 0x299   :  { %v848_v55 = vsel %vm847_vm8, %v844_v45, %v846_v54  ;;  %v849_v56 = vsel %vm847_vm8, %v846_v54, %v844_v45  ;;  %2349 = vmatpush1.msk.msra.mxu1 %vm199_vm1, %v681_v43 }
 0x29a   :  { %v861_v57 = vmul.f32 %v2744_v46, %v849_v56  ;;  %v862_v58 = vmul.f32 %v2747_v47, %v848_v55  ;;  %2350 = vmatmul.mubr.msk.f32.vlgmr.msra.gmra.mxu1 %vm195_vm2, %v2752_v49  ;;  %v1048_v59 = vpop.permute.xlu1 %1047 }
 0x29b   :  { %936 = vmatprep.mubr.f32.mxu1 %v2466_v0 }
 0x29c   :  { %v1050_v7 = vpop.permute.xlu0 %1049  ;;  %2354 = vmatprep.subr.msk.mxu1 %vm199_vm1, %v862_v58 }
 0x29d   :  { %v1052_v9 = vsel %vm1051_vm9, %v1048_v59, %v1050_v7  ;;  %v1053_v10 = vsel %vm1051_vm9, %v1050_v7, %v1048_v59  ;;  %2355 = vmatpush1.msk.msra.mxu1 %vm199_vm1, %v861_v57 }
 0x29e   :  { %v1065_v11 = vmul.f32 %v2769_v61, %v1052_v9  ;;  %v1066_v12 = vmul.f32 %v2772_v62, %v1053_v10  ;;  %2356 = vmatmul.mubr.msk.f32.vlgmr.msra.gmra.mxu1 %vm195_vm2, %v2778_v63  ;;  %v946_v21 = vpop.permute.xlu1 %945 }
 0x29f   :  { %1140 = vmatprep.mubr.f32.mxu1 %v2466_v0 }
 0x2a0   :  { %v948_v22 = vpop.permute.xlu0 %947  ;;  %2360 = vmatprep.subr.msk.mxu1 %vm199_vm1, %v1066_v12 }
 0x2a1   :  { %v950_v20 = vsel %vm949_vm10, %v946_v21, %v948_v22  ;;  %v951_v23 = vsel %vm949_vm10, %v948_v22, %v946_v21  ;;  %2361 = vmatpush1.msk.msra.mxu1 %vm199_vm1, %v1065_v11 }
 0x2a2   :  { %v963_v27 = vmul.f32 %v2795_v13, %v950_v20  ;;  %v964_v31 = vmul.f32 %v2798_v14, %v951_v23  ;;  %2362 = vmatmul.mubr.msk.f32.vlgmr.msra.gmra.mxu1 %vm195_vm2, %v2804_v16  ;;  %1306 = vmatprep.subr.mxu1 %v2809_v17 }
 0x2a3   :  { %1307 = vmatpush1.msra.mxu1 %v2815_v19  ;;  %1342 = vmatprep.mubr.f32.mxu1 %v2466_v0 }
 0x2a4   :  { %2357 = vmatprep.subr.msk.mxu0 %vm199_vm1, %v964_v31  ;;  %1308 = vmatprep.subr.mxu1 %v2825_v24 }
 0x2a5   :  { %2358 = vmatpush1.msk.msra.mxu0 %vm199_vm1, %v963_v27  ;;  %1309 = vmatpush1.msra.mxu1 %v2835_v32 }
 0x2a6   :  { %2359 = vmatmul.mubr.msk.f32.vlgmr.msra.gmra.mxu0 %vm195_vm2, %v2842_v33  ;;  %2371 = vmatmul.mubr.msk.f32.vlgmr.msra.gmra.mxu1 %vm96_vm0, %v2560_v6 }
 0x2a7   :  { %1244 = vmatprep.mubr.f32.mxu0 %v2466_v0  ;;  %1429 = vmatprep.mubr.f32.mxu1 %v2466_v0 }
 0x2ab   :  { %v2856_v22 = vpop.permute.xlu1 %1151 }
 0x2e4   :  { %v838_v40 = vpop.f32.mrf.mxu0 }
 0x2e6   :  { %v840_v44 = vpop.f32.mrf.mxu0 }
 0x35a   :  { %v758_v37 = vpop.f32.mrf.mxu1 }
 0x35b   :  { %v839_v50 = vadd.f32 %v838_v40, %v758_v37  ;;  %v2880_v40 = vld [vmem:[%s3034_s4 + $0x8] sm:$0xff] }
 0x35c   :  { %v760_v38 = vpop.f32.mrf.mxu1 }
 0x35d   :  { %v841_v55 = vadd.f32 %v840_v44, %v760_v38 }
 0x35e   :  { %v938_v42 = vpop.f32.mrf.mxu1 }
 0x35f   :  { %v943_v56 = vadd.f32 %v938_v42, %v839_v50 }
 0x360   :  { %v940_v43 = vpop.f32.mrf.mxu1 }
 0x361   :  { %v944_v59 = vadd.f32 %v940_v43, %v841_v55 }
 0x362   :  { %v1142_v45 = vpop.f32.mrf.mxu1 }
 0x364   :  { %v1144_v54 = vpop.f32.mrf.mxu1 }
 0x366   :  { %v1040_v57 = vpop.f32.mrf.mxu0  ;;  %v1344_v58 = vpop.f32.mrf.mxu1 }
 0x367   :  { %v1045_v1 = vadd.f32 %v1040_v57, %v943_v56  ;;  %v1345_v6 = vadd.f32 %v1344_v58, %v2570_v8 }
 0x368   :  { %v1042_v7 = vpop.f32.mrf.mxu0  ;;  %v1346_v9 = vpop.f32.mrf.mxu1 }
 0x369   :  { %v1147_v10 = vadd.f32 %v1142_v45, %v1045_v1  ;;  %v1349_v11 = vmax.f32 %v1345_v6, 0.0  ;;  %v1046_v12 = vadd.f32 %v1042_v7, %v944_v59  ;;  %v1347_v21 = vadd.f32 %v1346_v9, %v2570_v8  ;;  %v2868_v8 = vld [vmem:[%s3034_s4] sm:$0xff] }
 0x36b   :  { %v1148_v20 = vadd.f32 %v1144_v54, %v1046_v12  ;;  %v1350_v23 = vmax.f32 %v1347_v21, 0.0  ;;  %1351 = vrot.lane.b32.xlu0 %v1349_v11, %s2469_s27  ;;  %v1154_v27 = vadd.f32 %v2856_v22, %v1147_v10 }
 0x36d   :  { %v1155_v31 = vadd.f32 %v2856_v22, %v1148_v20  ;;  %1353 = vrot.lane.b32.xlu1 %v1350_v23, %s2469_s27  ;;  %v1156_v38 = vmax.f32 %v1154_v27, 0.0 }
 0x36f   :  { %v1157_v37 = vmax.f32 %v1155_v31, 0.0  ;;  %1513 = vrot.lane.b32.xlu0 %v1349_v11, %s2468_s5 }
 0x371   :  { %1515 = vrot.lane.b32.xlu1 %v1350_v23, %s2468_s5  ;;  %2363 = vmatprep.subr.msk.mxu0 %vm199_vm1, %v1157_v37 }
 0x372   :  { %2364 = vmatpush1.msk.msra.mxu0 %vm199_vm1, %v1156_v38 }
 0x373   :  { %1600 = vrot.lane.b32.xlu0 %v1349_v11, %s2470_s30  ;;  %2375 = vmatprep.subr.msk.mxu0 %vm199_vm1, %v1350_v23 }
 0x374   :  { %2365 = vmatmul.mubr.msk.f32.vlgmr.msra.gmra.mxu0 %vm195_vm2, %v2868_v8 }
 0x375   :  { %2376 = vmatpush1.msk.msra.mxu0 %vm199_vm1, %v1349_v11  ;;  %1602 = vrot.lane.b32.xlu1 %v1350_v23, %s2470_s30 }
 0x376   :  { %1250 = vmatprep.mubr.f32.mxu0 %v2466_v0 }
 0x377   :  { %1687 = vrot.lane.b32.xlu0 %v1349_v11, %s2471_s11 }
 0x378   :  { %2366 = vmatmul.mubr.msk.f32.gmra.mxu0 %vm195_vm2, %v2880_v40 }
 0x379   :  { %1689 = vrot.lane.b32.xlu1 %v1350_v23, %s2471_s11  ;;  %1506 = vmatprep.mubr.f32.mxu0 %v2466_v0 }
 0x37c   :  { %2377 = vmatmul.mubr.msk.f32.vlgmr.msra.gmra.mxu0 %vm195_vm2, %v2580_v15 }
 0x37d   :  { %1678 = vmatprep.mubr.f32.mxu0 %v2466_v0 }
 0x3dd   :  { %v1352_v42 = vpop.permute.xlu0 %1351 }
 0x3df   :  { %v1354_v43 = vpop.permute.xlu1 %1353 }
 0x3e0   :  { %v1355_v44 = vsel %vm179_vm3, %v1352_v42, %v1354_v43  ;;  %v1356_v45 = vsel %vm179_vm3, %v1354_v43, %v1352_v42 }
 0x3e1   :  { %v1357_v50 = vmul.f32 %v1356_v45, %v2606_v25  ;;  %v1358_v54 = vmul.f32 %v1355_v44, %v2609_v26  ;;  %v1514_v55 = vpop.permute.xlu0 %1513 }
 0x3e3   :  { %2372 = vmatprep.subr.msk.mxu1 %vm199_vm1, %v1358_v54  ;;  %v1516_v56 = vpop.permute.xlu1 %1515 }
 0x3e4   :  { %v1517_v15 = vsel %vm361_vm4, %v1514_v55, %v1516_v56  ;;  %v1518_v57 = vsel %vm361_vm4, %v1516_v56, %v1514_v55  ;;  %2373 = vmatpush1.msk.msra.mxu1 %vm199_vm1, %v1357_v50 }
 0x3e5   :  { %v1519_v58 = vmul.f32 %v1518_v57, %v2616_v29  ;;  %v1520_v59 = vmul.f32 %v1517_v15, %v2619_v30  ;;  %v1601_v1 = vpop.permute.xlu0 %1600  ;;  %2374 = vmatmul.mubr.msk.f32.vlgmr.msra.gmra.mxu1 %vm195_vm2, %v2644_v41  ;;  %v71_v15 = vld [vmem:[%s3037_s7] sm:$0xff] }
 0x3e6   :  { %1591 = vmatprep.mubr.f32.mxu1 %v2466_v0 }
 0x3e7   :  { %2378 = vmatprep.subr.msk.mxu1 %vm199_vm1, %v1520_v59  ;;  %v1603_v25 = vpop.permute.xlu1 %1602 }
 0x3e8   :  { %v1604_v26 = vsel %vm463_vm5, %v1601_v1, %v1603_v25  ;;  %v1605_v6 = vsel %vm463_vm5, %v1603_v25, %v1601_v1  ;;  %2379 = vmatpush1.msk.msra.mxu1 %vm199_vm1, %v1519_v58 }
 0x3e9   :  { %v1606_v29 = vmul.f32 %v1604_v26, %v2629_v35  ;;  %v1607_v30 = vmul.f32 %v1605_v6, %v2636_v39  ;;  %2380 = vmatmul.mubr.msk.f32.vlgmr.msra.gmra.mxu1 %vm195_vm2, %v2671_v52  ;;  %v1688_v41 = vpop.permute.xlu0 %1687 }
 0x3ea   :  { %1765 = vmatprep.mubr.f32.mxu1 %v2466_v0 }
 0x3eb   :  { %v1690_v7 = vpop.permute.xlu1 %1689  ;;  %2381 = vmatprep.subr.msk.mxu0 %vm199_vm1, %v1607_v30 }
 0x3ec   :  { %v1691_v9 = vsel %vm565_vm6, %v1688_v41, %v1690_v7  ;;  %v1692_v10 = vsel %vm565_vm6, %v1690_v7, %v1688_v41  ;;  %2382 = vmatpush1.msk.msra.mxu0 %vm199_vm1, %v1606_v29 }
 0x3ed   :  { %v1693_v35 = vmul.f32 %v1691_v9, %v2655_v48  ;;  %v1694_v39 = vmul.f32 %v1692_v10, %v2664_v51  ;;  %2383 = vmatmul.mubr.msk.f32.vlgmr.msra.gmra.mxu0 %vm195_vm2, %v2676_v53 }
 0x3ee   :  { %1852 = vmatprep.mubr.f32.mxu0 %v2466_v0 }
 0x3ef   :  { %2384 = vmatprep.subr.msk.mxu1 %vm199_vm1, %v1694_v39 }
 0x3f0   :  { %2385 = vmatpush1.msk.msra.mxu1 %vm199_vm1, %v1693_v35 }
 0x3f1   :  { %2386 = vmatmul.mubr.msk.f32.vlgmr.msra.gmra.mxu1 %vm195_vm2, %v2694_v60 }
 0x3f2   :  { %1929 = vmatprep.mubr.f32.mxu1 %v2466_v0 }
 0x434   :  { %v2935_v52 = vpop.f32.mrf.mxu0 }
 0x436   :  { %v2937_v11 = vpop.f32.mrf.mxu0 }
 0x438   :  { %v2939_v48 = vpop.f32.mrf.mxu0 }
 0x43a   :  { %v2941_v51 = vpop.f32.mrf.mxu0 }
 0x43c   :  { %v1508_v12 = vpop.f32.mrf.mxu0 }
 0x43e   :  { %v1510_v23 = vpop.f32.mrf.mxu0 }
 0x4a5   :  { %v1431_v53 = vpop.f32.mrf.mxu1 }
 0x4a6   :  { %v1509_v20 = vadd.f32 %v1508_v12, %v1431_v53 }
 0x4a7   :  { %v1433_v21 = vpop.f32.mrf.mxu1 }
 0x4a8   :  { %v1511_v31 = vadd.f32 %v1510_v23, %v1433_v21  ;;  %v1261_v21 = vmax.f32 %v2557_v5, 0.0 }
 0x4a9   :  { %v1593_v27 = vpop.f32.mrf.mxu1 }
 0x4aa   :  { %v1598_v37 = vadd.f32 %v1593_v27, %v1509_v20  ;;  %v1263_v20 = vmax.f32 %v2546_v3, 0.0 }
 0x4ab   :  { %v1595_v38 = vpop.f32.mrf.mxu1 }
 0x4ac   :  { %v1599_v43 = vadd.f32 %v1595_v38, %v1511_v31 }
 0x4ad   :  { %v1680_v60 = vpop.f32.mrf.mxu0 }
 0x4ae   :  { %v1685_v44 = vadd.f32 %v1680_v60, %v1598_v37 }
 0x4af   :  { %v1682_v42 = vpop.f32.mrf.mxu0 }
 0x4b0   :  { %v1686_v50 = vadd.f32 %v1682_v42, %v1599_v43 }
 0x4b1   :  { %v1767_v45 = vpop.f32.mrf.mxu1 }
 0x4b2   :  { %v1772_v54 = vadd.f32 %v1767_v45, %v1685_v44 }
 0x4b3   :  { %v1769_v55 = vpop.f32.mrf.mxu1 }
 0x4b4   :  { %v1773_v56 = vadd.f32 %v1769_v55, %v1686_v50  ;;  %1774 = vrot.lane.b32.xlu0 %v1772_v54, %s2472_s2 }
 0x4b6   :  { %1776 = vrot.lane.b32.xlu1 %v1773_v56, %s2472_s2  ;;  %2390 = vmatprep.subr.msk.mxu1 %vm199_vm1, %v1773_v56 }
 0x4b7   :  { %2391 = vmatpush1.msk.msra.mxu1 %vm199_vm1, %v1772_v54 }
 0x4b8   :  { %1936 = vrot.lane.b32.xlu0 %v1772_v54, %s2473_s29  ;;  %2392 = vmatmul.mubr.msk.f32.vlgmr.msra.gmra.mxu1 %vm195_vm2, %v2706_v28  ;;  %v72_v28 = vld [vmem:[%s3037_s7 + $0x8] sm:$0xff]  ;;  %s2476_s7 = smov [#allocation5]  }
 0x4b9   :  { %2101 = vmatprep.mubr.f32.mxu1 %v2466_v0 }
 0x4ba   :  { %1938 = vrot.lane.b32.xlu1 %v1773_v56, %s2473_s29 }
 0x4bc   :  { %2023 = vrot.lane.b32.xlu0 %v1772_v54, %s2475_s13 }
 0x4be   :  { %2025 = vrot.lane.b32.xlu1 %v1773_v56, %s2475_s13 }
 0x4c0   :  { %2110 = vrot.lane.b32.xlu0 %v1772_v54, %s2474_s12 }
 0x4c2   :  { %2112 = vrot.lane.b32.xlu1 %v1773_v56, %s2474_s12  ;;  %s2306_s12 = sshll.u32 %s2476_s7, 4  ;;  %s2307_s12 = int_to_ptr.vmem [resolvable:$true] %s2306_s12 }
 0x4c3   :  { %s2441_s13 = scalar_lea.vmem %s2307_s12, 1024  ;;  %p2446_p6 = scmp.lt.s32.totalorder %s2307_s12, %s2307_s12 }
 0x4c4   :  { %1160 = vperm.xlu0 %2419, %v71_v15   ;;  %p2442_p5 = scmp.ne.s32.totalorder %s2307_s12, %s2441_s13  ;;  %p2447_p7 = scmp.lt.s32.totalorder %s2441_s13, %s2441_s13 }
 0x4c6   :  { %1165 = vperm.xlu1 %2420, %v72_v28   ;;  %p2448_p8 = por %p2447_p7, %p2446_p6 }
 0x4c8   :  { %p2449_p9 = pnand %p2448_p8, %p2442_p5 }
 0x526   :  { %v1775_v57 = vpop.permute.xlu0 %1774 }
 0x528   :  { %v1777_v58 = vpop.permute.xlu1 %1776 }
 0x529   :  { %v1778_v59 = vsel %vm667_vm7, %v1775_v57, %v1777_v58  ;;  %v1779_v1 = vsel %vm667_vm7, %v1777_v58, %v1775_v57 }
 0x52a   :  { %v1780_v25 = vmul.f32 %v1779_v1, %v2728_v34  ;;  %v1781_v26 = vmul.f32 %v1778_v59, %v2731_v36  ;;  %v1937_v6 = vpop.permute.xlu0 %1936 }
 0x52c   :  { %v1939_v29 = vpop.permute.xlu1 %1938  ;;  %2387 = vmatprep.subr.msk.mxu0 %vm199_vm1, %v1781_v26 }
 0x52d   :  { %v1940_v30 = vsel %vm847_vm8, %v1937_v6, %v1939_v29  ;;  %v1941_v41 = vsel %vm847_vm8, %v1939_v29, %v1937_v6  ;;  %2388 = vmatpush1.msk.msra.mxu0 %vm199_vm1, %v1780_v25 }
 0x52e   :  { %v1942_v7 = vmul.f32 %v1941_v41, %v2744_v46  ;;  %v1943_v9 = vmul.f32 %v1940_v30, %v2747_v47  ;;  %2389 = vmatmul.mubr.msk.f32.vlgmr.msra.gmra.mxu0 %vm195_vm2, %v2752_v49  ;;  %v2024_v34 = vpop.permute.xlu0 %2023  ;;  %v2288_v41 = vmax.f32 %v2835_v32, 0.0 }
 0x52f   :  { %2014 = vmatprep.mubr.f32.mxu0 %v2466_v0 }
 0x530   :  { %v2026_v36 = vpop.permute.xlu1 %2025  ;;  %2393 = vmatprep.subr.msk.mxu0 %vm199_vm1, %v1943_v9 }
 0x531   :  { %v2027_v10 = vsel %vm949_vm10, %v2024_v34, %v2026_v36  ;;  %v2028_v35 = vsel %vm949_vm10, %v2026_v36, %v2024_v34  ;;  %2394 = vmatpush1.msk.msra.mxu0 %vm199_vm1, %v1942_v7 }
 0x532   :  { %v2029_v46 = vmul.f32 %v2027_v10, %v2795_v13  ;;  %v2030_v47 = vmul.f32 %v2028_v35, %v2798_v14  ;;  %2395 = vmatmul.mubr.msk.f32.vlgmr.msra.gmra.mxu0 %vm195_vm2, %v2778_v63  ;;  %v2111_v49 = vpop.permute.xlu0 %2110  ;;  %v1262_v63 = vmax.f32 %v2551_v4, 0.0  ;;  %v2290_v35 = vmax.f32 %v2815_v19, 0.0 }
 0x533   :  { %2188 = vmatprep.mubr.f32.mxu0 %v2466_v0 }
 0x534   :  { %v2113_v39 = vpop.permute.xlu1 %2112  ;;  %2396 = vmatprep.subr.msk.mxu1 %vm199_vm1, %v2030_v47 }
 0x535   :  { %v2114_v53 = vsel %vm1051_vm9, %v2111_v49, %v2113_v39  ;;  %v2115_v12 = vsel %vm1051_vm9, %v2113_v39, %v2111_v49  ;;  %2397 = vmatpush1.msk.msra.mxu1 %vm199_vm1, %v2029_v46 }
 0x536   :  { %v2116_v13 = vmul.f32 %v2114_v53, %v2769_v61  ;;  %v2117_v14 = vmul.f32 %v2115_v12, %v2772_v62  ;;  %2398 = vmatmul.mubr.msk.f32.vlgmr.msra.gmra.mxu1 %vm195_vm2, %v2842_v33  ;;  %v1264_v33 = vmax.f32 %v2541_v2, 0.0 }
 0x537   :  { %2271 = vmatprep.mubr.f32.mxu1 %v2466_v0 }
 0x538   :  { %2399 = vmatprep.subr.msk.mxu0 %vm199_vm1, %v2117_v14 }
 0x539   :  { %2400 = vmatpush1.msk.msra.mxu0 %vm199_vm1, %v2116_v13 }
 0x53a   :  { %2401 = vmatmul.mubr.msk.f32.vlgmr.msra.gmra.mxu0 %vm195_vm2, %v2804_v16 }
 0x53f   :  { %v1161_v18 = vpop.permute.xlu0 %1160 }
 0x540   :  { %v1247_v61 = vadd.f32 %v2935_v52, %v1161_v18  ;;  %v1249_v62 = vadd.f32 %v2937_v11, %v1161_v18 }
 0x541   :  { %v1166_v23 = vpop.permute.xlu1 %1165 }
 0x542   :  { %v1257_v27 = vmax.f32 %v1247_v61, 0.0  ;;  %v1258_v31 = vmax.f32 %v1249_v62, 0.0  ;;  %v1253_v37 = vadd.f32 %v2939_v48, %v1166_v23  ;;  %v1255_v16 = vadd.f32 %v2941_v51, %v1166_v23 }
 0x544   :  { %v1265_v38 = vadd.f32 %v1261_v21, %v1257_v27  ;;  %v1266_v60 = vadd.f32 %v1262_v63, %v1258_v31  ;;  %v1259_v4 = vmax.f32 %v1253_v37, 0.0  ;;  %v1260_v42 = vmax.f32 %v1255_v16, 0.0 }
 0x546   :  { %1269 = vst [vmem:[#allocation5] sm:$0xff] %v1265_v38  ;;  %1270 = vst [vmem:[#allocation5 + $0x8] sm:$0xff] %v1266_v60  ;;  %v1267_v5 = vadd.f32 %v1263_v20, %v1259_v4  ;;  %v1268_v52 = vadd.f32 %v1264_v33, %v1260_v42 }
 0x548   :  { %1271 = vst [vmem:[#allocation5 + $0x10] sm:$0xff] %v1267_v5  ;;  %1272 = vst [vmem:[#allocation5 + $0x18] sm:$0xff] %v1268_v52 }
 0x578   :  { %v1931_v11 = vpop.f32.mrf.mxu1 }
 0x57a   :  { %v1933_v44 = vpop.f32.mrf.mxu1 }
 0x5ee   :  { %v1854_v2 = vpop.f32.mrf.mxu0 }
 0x5ef   :  { %v1932_v43 = vadd.f32 %v1931_v11, %v1854_v2 }
 0x5f0   :  { %v1856_v3 = vpop.f32.mrf.mxu0 }
 0x5f1   :  { %v1934_v50 = vadd.f32 %v1933_v44, %v1856_v3 }
 0x5f2   :  { %v2016_v45 = vpop.f32.mrf.mxu0 }
 0x5f3   :  { %v2021_v48 = vadd.f32 %v2016_v45, %v1932_v43 }
 0x5f4   :  { %v2018_v54 = vpop.f32.mrf.mxu0 }
 0x5f5   :  { %v2022_v56 = vadd.f32 %v2018_v54, %v1934_v50 }
 0x5f6   :  { %v2103_v51 = vpop.f32.mrf.mxu1 }
 0x5f7   :  { %v2108_v15 = vadd.f32 %v2103_v51, %v2021_v48 }
 0x5f8   :  { %v2105_v55 = vpop.f32.mrf.mxu1 }
 0x5f9   :  { %v2109_v57 = vadd.f32 %v2105_v55, %v2022_v56 }
 0x5fa   :  { %v2190_v28 = vpop.f32.mrf.mxu0 }
 0x5fb   :  { %v2195_v58 = vadd.f32 %v2190_v28, %v2108_v15 }
 0x5fc   :  { %v2192_v59 = vpop.f32.mrf.mxu0 }
 0x5fd   :  { %v2196_v1 = vadd.f32 %v2192_v59, %v2109_v57  ;;  %v2197_v25 = vadd.f32 %v2195_v58, %v2856_v22 }
 0x5ff   :  { %v2198_v26 = vadd.f32 %v2196_v1, %v2856_v22  ;;  %v2199_v29 = vmax.f32 %v2197_v25, 0.0  ;;  %v2289_v22 = vmax.f32 %v2825_v24, 0.0 }
 0x601   :  { %v2200_v6 = vmax.f32 %v2198_v26, 0.0 }
 0x603   :  { %2402 = vmatprep.subr.msk.mxu1 %vm199_vm1, %v2200_v6 }
 0x604   :  { %2403 = vmatpush1.msk.msra.mxu1 %vm199_vm1, %v2199_v29 }
 0x605   :  { %2404 = vmatmul.mubr.msk.f32.vlgmr.msra.gmra.mxu1 %vm195_vm2, %v2868_v8 }
 0x606   :  { %2277 = vmatprep.mubr.f32.mxu1 %v2466_v0  ;;  %v2291_v0 = vmax.f32 %v2809_v17, 0.0 }
 0x609   :  { %2405 = vmatmul.mubr.msk.f32.gmra.mxu1 %vm195_vm2, %v2880_v40 }
 0x6c5   :  { %v2273_v30 = vpop.f32.mrf.mxu1 }
 0x6c6   :  { %v2274_v7 = vadd.f32 %v2273_v30, %v1161_v18 }
 0x6c7   :  { %v2275_v9 = vpop.f32.mrf.mxu1 }
 0x6c8   :  { %v2284_v34 = vmax.f32 %v2274_v7, 0.0  ;;  %v2276_v36 = vadd.f32 %v2275_v9, %v1161_v18 }
 0x6c9   :  { %v2279_v10 = vpop.f32.mrf.mxu1 }
 0x6ca   :  { %v2292_v46 = vadd.f32 %v2288_v41, %v2284_v34  ;;  %v2285_v47 = vmax.f32 %v2276_v36, 0.0  ;;  %v2280_v8 = vadd.f32 %v2279_v10, %v1166_v23 }
 0x6cb   :  { %v2281_v49 = vpop.f32.mrf.mxu1 }
 0x6cc   :  { %2297 = vst [vmem:[#allocation5 + $0x20] sm:$0xff] %v2292_v46  ;;  %v2293_v40 = vadd.f32 %v2289_v22, %v2285_v47  ;;  %v2286_v39 = vmax.f32 %v2280_v8, 0.0  ;;  %v2282_v53 = vadd.f32 %v2281_v49, %v1166_v23 }
 0x6ce   :  { %2298 = vst [vmem:[#allocation5 + $0x28] sm:$0xff] %v2293_v40  ;;  %v2294_v32 = vadd.f32 %v2290_v35, %v2286_v39  ;;  %v2287_v24 = vmax.f32 %v2282_v53, 0.0 }
 0x6d0   :  { %2299 = vst [vmem:[#allocation5 + $0x30] sm:$0xff] %v2294_v32  ;;  %v2295_v12 = vadd.f32 %v2291_v0, %v2287_v24 }
 0x6d2   :  { %2300 = vst [vmem:[#allocation5 + $0x38] sm:$0xff] %v2295_v12 }
 0x6d3   :  { %2452 = shalt.err (!%p2449_p9)
}
 0x6d4   :  { %s2477_s21 = smov 256  }
 0x6d5   :  { %2312 = dma.vmem_to_hbm [thread:$0]  %s2307_s12, 1024, %s3040_s10, [#allocation4], %s2477_s21, %s2477_s21, %s2473_s29  }
 0x6d6   :  { %2463 = dma.done.wait [#allocation4], 1024  }
 0x6d7   :  { %2464 = vsyncadd [#allocation4], 4294966272 }
 0x6d8   :  { %2316 = vsyncpa [#allocation3], 1 }
 0x6d9   :  { %2317 = vsyncpa [#allocation4], 1 }

</bundles_post_ra>
